<compile_context>
chip_gen: v6e
topology: v6e:2x2x1
jax: 0.10.0
libtpu: 0.0.40
codegen_flags: <defaults>
</compile_context>

<pallas_src>
import functools

import jax
import jax.numpy as jnp
from jax import lax
from jax.experimental import pallas as pl
from jax.experimental.pallas import tpu as pltpu


# ----------------------------- Pallas kernel --------------------------------

def _fused_shuffle_unit_kernel(x_ref, wpk_ref, bpk_ref, wm_ref, out_ref,
                               *, H, W, B_blk, C):
    """Fused ShuffleNet unit (benchmodel=1, stride=1) for one batch block.

    Shapes (all float32):
      x_ref:   (B_blk, 2C, HW)          full input block, spatial on lanes
      wpk_ref: (2C, C)                  rows 0:C  = BN-folded w1, rows C:2C = w3
      bpk_ref: (2C, 1)                  rows 0:C  = b1, rows C:2C = b3 (+folded b2)
      wm_ref:  (9, C, B_blk*HW)         masked dw tap planes (weight * edge mask)
      out_ref: (B_blk, C, 2*HW)         shuffled output, (C, 2, HW) flattened
    """
    HW = H * W
    total = B_blk * HW

    w1 = wpk_ref[0:C, :]                               # (C, C)
    w3 = wpk_ref[C:2 * C, :]                           # (C, C)
    b1 = bpk_ref[0:C, :]                               # (C, 1)
    b3 = bpk_ref[C:2 * C, :]                           # (C, 1)

    # Pack the x2 halves of every image in this block along the lane axis.
    x2 = jnp.concatenate([x_ref[i, C:2 * C, :] for i in range(B_blk)], axis=1)

    # --- 1x1 conv (+folded BN) + ReLU: one wide MXU matmul, N = B_blk*HW ---
    y = jnp.dot(w1, x2, preferred_element_type=jnp.float32)
    y = jnp.maximum(y + b1, 0.0)                       # (C, total)

    # --- depthwise 3x3, stride 1, pad 1: 9 taps, masks pre-folded into weights ---
    acc = y * wm_ref[4]                                # centre tap, mask all-true
    for k in range(9):
        if k == 4:
            continue
        dy, dx = divmod(k, 3)
        shift = -((dy - 1) * W + (dx - 1))             # tap[p] = y[p + (dy-1)*W + (dx-1)]
        acc = acc + pltpu.roll(y, shift % total, axis=1) * wm_ref[k]
    # dw-BN bias b2 is folded into b3 (linear path, no ReLU between), so no add here.

    # --- 1x1 conv (+folded BN, +folded b2) + ReLU ---
    o = jnp.dot(w3, acc, preferred_element_type=jnp.float32)
    o = jnp.maximum(o + b3, 0.0).astype(out_ref.dtype)  # (C, total)

    # --- fused concat + channel_shuffle(groups=2) ---
    # out memory layout == shuffled (2C, HW):  [:, k, 0:HW] -> channel 2k   (= x1[k])
    #                                          [:, k, HW:]  -> channel 2k+1 (= branch[k])
    for i in range(B_blk):
        out_ref[i, :, 0:HW] = x_ref[i, 0:C, :]
        out_ref[i, :, HW:2 * HW] = o[:, i * HW:(i + 1) * HW]


# ------------------------------ module wrapper -------------------------------

@functools.partial(jax.jit, static_argnames=("b_blk",))
def inverted_residual_forward(x_nchw, params, b_blk=1):
    """benchmodel=1, stride=1.  Input/output NCHW, matching PyTorch."""
    B, Cin, H, W = x_nchw.shape
    C = Cin // 2
    HW = H * W
    assert B % b_blk == 0
    grid = B // b_blk

    x_flat = x_nchw.reshape(B, Cin, HW)                # free reshape, NCHW-compatible

    out = pl.pallas_call(
        functools.partial(_fused_shuffle_unit_kernel, H=H, W=W, B_blk=b_blk, C=C),
        out_shape=jax.ShapeDtypeStruct((B, C, 2 * HW), jnp.float32),
        grid_spec=pltpu.PrefetchScalarGridSpec(
            num_scalar_prefetch=0,
            grid=(grid,),
            in_specs=[
                pl.BlockSpec((b_blk, Cin, HW), lambda g: (g, 0, 0)),
                pl.BlockSpec((2 * C, C), lambda g: (0, 0)),
                pl.BlockSpec((2 * C, 1), lambda g: (0, 0)),
                pl.BlockSpec((9, C, b_blk * HW), lambda g: (0, 0, 0)),
            ],
            out_specs=pl.BlockSpec((b_blk, C, 2 * HW), lambda g: (g, 0, 0)),
        ),
        compiler_params=pltpu.CompilerParams(
            dimension_semantics=("parallel",)),        # 2 grid steps -> both v7x TCs
    )(x_flat, params["wpk"], params["bpk"], params["wm"])

    # (B, C, 2*HW) is contiguous-identical to the shuffled (B, 2C, H, W) tensor.
    return out.reshape(B, Cin, H, W)


# --------------------------- parameter construction -------------------------

def _bn_scale_bias(key, C):
    k1, k2, k3, k4 = jax.random.split(key, 4)
    gamma = 1.0 + 0.1 * jax.random.normal(k1, (C,), jnp.float32)
    beta = 0.1 * jax.random.normal(k2, (C,), jnp.float32)
    mean = 0.1 * jax.random.normal(k3, (C,), jnp.float32)
    var = jnp.abs(jax.random.normal(k4, (C,), jnp.float32)) + 0.5
    scale = gamma / jnp.sqrt(var + 1e-5)
    bias = beta - mean * scale
    return scale, bias


def make_raw_params(key, C):
    """PyTorch-equivalent parameters (conv weights + inference-mode BN stats)."""
    ks = jax.random.split(key, 6)
    s1, b1 = _bn_scale_bias(ks[3], C)
    s2, b2 = _bn_scale_bias(ks[4], C)
    s3, b3 = _bn_scale_bias(ks[5], C)
    return {
        "w1": 0.1 * jax.random.normal(ks[0], (C, C), jnp.float32),     # (Cout, Cin)
        "wdw": 0.1 * jax.random.normal(ks[1], (C, 3, 3), jnp.float32),
        "w3": 0.1 * jax.random.normal(ks[2], (C, C), jnp.float32),
        "s1": s1, "b1": b1, "s2": s2, "b2": b2, "s3": s3, "b3": b3,
    }


def prepare_fused_params(raw, H, W, b_blk=1):
    """Fold BN into weights, fold b2 through w3, pack small params, and
    precompute the masked depthwise tap planes for a b_blk-image lane packing."""
    C = raw["w1"].shape[0]
    HW = H * W

    w1f = raw["w1"] * raw["s1"][:, None]
    w3f = raw["w3"] * raw["s3"][:, None]
    b1 = raw["b1"]
    b3f = w3f @ raw["b2"] + raw["b3"]                  # fold dw-BN bias through 2nd 1x1
    wdwf = raw["wdw"] * raw["s2"][:, None, None]       # (C, 3, 3)

    pos = jnp.arange(HW)
    h = pos // W
    w = pos % W
    planes = []
    for dy in range(3):
        for dx in range(3):
            hh = h + dy - 1
            ww = w + dx - 1
            mask = ((hh >= 0) & (hh < H) & (ww >= 0) & (ww < W)).astype(jnp.float32)
            planes.append(wdwf[:, dy, dx][:, None] * mask[None, :])    # (C, HW)
    wm = jnp.stack(planes, axis=0)                     # (9, C, HW)
    wm = jnp.tile(wm, (1, 1, b_blk))                   # (9, C, b_blk*HW)

    return {
        "wpk": jnp.concatenate([w1f, w3f], axis=0),                    # (2C, C)
        "bpk": jnp.concatenate([b1[:, None], b3f[:, None]], axis=0),   # (2C, 1)
        "wm": wm,
    }


# ------------------------------ JAX reference --------------------------------

def channel_shuffle(x_nchw, groups):
    B, C, H, W = x_nchw.shape
    x = x_nchw.reshape(B, groups, C // groups, H, W)
    x = jnp.transpose(x, (0, 2, 1, 3, 4))
    return x.reshape(B, C, H, W)


def _ref_branch2(x_nchw, p):
    C = x_nchw.shape[1]
    dn = ("NCHW", "OIHW", "NCHW")
    hp = lax.Precision.HIGHEST
    y = lax.conv_general_dilated(x_nchw, p["w1"].reshape(C, C, 1, 1), (1, 1),
                                 "VALID", dimension_numbers=dn, precision=hp)
    y = jnp.maximum(y * p["s1"].reshape(1, C, 1, 1) + p["b1"].reshape(1, C, 1, 1), 0.0)
    z = lax.conv_general_dilated(y, p["wdw"].reshape(C, 1, 3, 3), (1, 1),
                                 ((1, 1), (1, 1)), dimension_numbers=dn,
                                 feature_group_count=C, precision=hp)
    z = z * p["s2"].reshape(1, C, 1, 1) + p["b2"].reshape(1, C, 1, 1)
    o = lax.conv_general_dilated(z, p["w3"].reshape(C, C, 1, 1), (1, 1),
                                 "VALID", dimension_numbers=dn, precision=hp)
    return jnp.maximum(o * p["s3"].reshape(1, C, 1, 1) + p["b3"].reshape(1, C, 1, 1), 0.0)


def _ref_forward(x_nchw, raw_params):
    c = x_nchw.shape[1] // 2
    x1, x2 = x_nchw[:, :c], x_nchw[:, c:]
    out = jnp.concatenate([x1, _ref_branch2(x2, raw_params)], axis=1)
    return channel_shuffle(out, 2)


# ---------------------------------- main -------------------------------------

if __name__ == "__main__":
    # InvertedResidual(inp=32, oup=32, stride=1, benchmodel=1)
    B, Cin, H, W = 2, 32, 16, 16
    oup_inc = Cin // 2  # 16 channels inside the branch

    key = jax.random.PRNGKey(0)
    kx, kp = jax.random.split(key)
    x = jax.random.normal(kx, (B, Cin, H, W), jnp.float32)
    raw = make_raw_params(kp, oup_inc)

    # Keep grid >= 2 so both v7x TensorCores get work; fold the rest of the
    # batch into each grid step (for B=2 this is one image per step).
    b_blk = max(1, B // 2)
    params = prepare_fused_params(raw, H, W, b_blk=b_blk)

    out = jax.block_until_ready(inverted_residual_forward(x, params, b_blk=b_blk))
    ref = jax.block_until_ready(_ref_forward(x, raw))

    assert out.shape == (B, Cin, H, W), out.shape
    assert jnp.allclose(out, ref, rtol=1e-2, atol=1e-3), (
        float(jnp.max(jnp.abs(out - ref))))

    print("KERNEL_OK")
</pallas_src>

<mosaic_0001>
module attributes {stable_mosaic.version = 11 : i64} {
  func.func @_fused_shuffle_unit_kernel(%arg0: i32, %arg1: memref<1x32x256xf32, #tpu.memory_space<vmem>>, %arg2: memref<32x16xf32, #tpu.memory_space<vmem>>, %arg3: memref<32x1xf32, #tpu.memory_space<vmem>>, %arg4: memref<9x16x256xf32, #tpu.memory_space<vmem>>, %arg5: memref<1x16x512xf32, #tpu.memory_space<vmem>>) attributes {dimension_semantics = [#tpu.dimension_semantics<parallel>], iteration_bounds = array<i64: 2>, scalar_prefetch = 0 : i64, scratch_operands = 0 : i64, tpu.core_type = #tpu.core_type<tc>, window_params = [{transform_indices = @transform_0, window_bounds = array<i64: 1, 32, 256>}, {pipeline_mode = #tpu.pipeline_mode<synchronous>, transform_indices = @transform_1, window_bounds = array<i64: 32, 16>}, {pipeline_mode = #tpu.pipeline_mode<synchronous>, transform_indices = @transform_2, window_bounds = array<i64: 32, 1>}, {pipeline_mode = #tpu.pipeline_mode<synchronous>, transform_indices = @transform_3, window_bounds = array<i64: 9, 16, 256>}, {transform_indices = @transform_4, window_bounds = array<i64: 1, 16, 512>}]} {
    %c0 = arith.constant 0 : index
    %c0_0 = arith.constant 0 : index
    %0 = vector.load %arg2[%c0, %c0_0] : memref<32x16xf32, #tpu.memory_space<vmem>>, vector<16x16xf32>
    %c16 = arith.constant 16 : index
    %c0_1 = arith.constant 0 : index
    %1 = vector.load %arg2[%c16, %c0_1] : memref<32x16xf32, #tpu.memory_space<vmem>>, vector<16x16xf32>
    %c0_2 = arith.constant 0 : index
    %c0_3 = arith.constant 0 : index
    %2 = vector.load %arg3[%c0_2, %c0_3] : memref<32x1xf32, #tpu.memory_space<vmem>>, vector<16x1xf32>
    %c16_4 = arith.constant 16 : index
    %c0_5 = arith.constant 0 : index
    %3 = vector.load %arg3[%c16_4, %c0_5] : memref<32x1xf32, #tpu.memory_space<vmem>>, vector<16x1xf32>
    %c0_6 = arith.constant 0 : index
    %c16_7 = arith.constant 16 : index
    %c0_8 = arith.constant 0 : index
    %4 = vector.load %arg1[%c0_6, %c16_7, %c0_8] : memref<1x32x256xf32, #tpu.memory_space<vmem>>, vector<1x16x256xf32>
    %5 = vector.shape_cast %4 : vector<1x16x256xf32> to vector<16x256xf32>
    %cst = arith.constant dense<0.000000e+00> : vector<16x256xf32>
    %6 = tpu.matmul %0, %5, %cst {dimension_numbers = #tpu.dot_dimension_numbers<[1], [0], [0], [1], [0, 0, 1, 1], [], []>} : vector<16x16xf32>, vector<16x256xf32>, vector<16x256xf32> -> vector<16x256xf32>
    %7 = vector.broadcast %2 : vector<16x1xf32> to vector<16x256xf32>
    %8 = arith.addf %6, %7 : vector<16x256xf32>
    %cst_9 = arith.constant 0.000000e+00 : f32
    %9 = vector.broadcast %cst_9 : f32 to vector<16x256xf32>
    %10 = arith.maximumf %8, %9 : vector<16x256xf32>
    %c4 = arith.constant 4 : index
    %c0_10 = arith.constant 0 : index
    %c0_11 = arith.constant 0 : index
    %11 = vector.load %arg4[%c4, %c0_10, %c0_11] : memref<9x16x256xf32, #tpu.memory_space<vmem>>, vector<1x16x256xf32>
    %12 = vector.shape_cast %11 : vector<1x16x256xf32> to vector<16x256xf32>
    %13 = arith.mulf %10, %12 : vector<16x256xf32>
    %c17_i32 = arith.constant 17 : i32
    %14 = tpu.dynamic_rotate %10 by %c17_i32 dim 1 : vector<16x256xf32>, i32 -> vector<16x256xf32>
    %c0_12 = arith.constant 0 : index
    %c0_13 = arith.constant 0 : index
    %c0_14 = arith.constant 0 : index
    %15 = vector.load %arg4[%c0_12, %c0_13, %c0_14] : memref<9x16x256xf32, #tpu.memory_space<vmem>>, vector<1x16x256xf32>
    %16 = vector.shape_cast %15 : vector<1x16x256xf32> to vector<16x256xf32>
    %17 = arith.mulf %14, %16 : vector<16x256xf32>
    %18 = arith.addf %13, %17 : vector<16x256xf32>
    %c16_i32 = arith.constant 16 : i32
    %19 = tpu.dynamic_rotate %10 by %c16_i32 dim 1 : vector<16x256xf32>, i32 -> vector<16x256xf32>
    %c1 = arith.constant 1 : index
    %c0_15 = arith.constant 0 : index
    %c0_16 = arith.constant 0 : index
    %20 = vector.load %arg4[%c1, %c0_15, %c0_16] : memref<9x16x256xf32, #tpu.memory_space<vmem>>, vector<1x16x256xf32>
    %21 = vector.shape_cast %20 : vector<1x16x256xf32> to vector<16x256xf32>
    %22 = arith.mulf %19, %21 : vector<16x256xf32>
    %23 = arith.addf %18, %22 : vector<16x256xf32>
    %c15_i32 = arith.constant 15 : i32
    %24 = tpu.dynamic_rotate %10 by %c15_i32 dim 1 : vector<16x256xf32>, i32 -> vector<16x256xf32>
    %c2 = arith.constant 2 : index
    %c0_17 = arith.constant 0 : index
    %c0_18 = arith.constant 0 : index
    %25 = vector.load %arg4[%c2, %c0_17, %c0_18] : memref<9x16x256xf32, #tpu.memory_space<vmem>>, vector<1x16x256xf32>
    %26 = vector.shape_cast %25 : vector<1x16x256xf32> to vector<16x256xf32>
    %27 = arith.mulf %24, %26 : vector<16x256xf32>
    %28 = arith.addf %23, %27 : vector<16x256xf32>
    %c1_i32 = arith.constant 1 : i32
    %29 = tpu.dynamic_rotate %10 by %c1_i32 dim 1 : vector<16x256xf32>, i32 -> vector<16x256xf32>
    %c3 = arith.constant 3 : index
    %c0_19 = arith.constant 0 : index
    %c0_20 = arith.constant 0 : index
    %30 = vector.load %arg4[%c3, %c0_19, %c0_20] : memref<9x16x256xf32, #tpu.memory_space<vmem>>, vector<1x16x256xf32>
    %31 = vector.shape_cast %30 : vector<1x16x256xf32> to vector<16x256xf32>
    %32 = arith.mulf %29, %31 : vector<16x256xf32>
    %33 = arith.addf %28, %32 : vector<16x256xf32>
    %c255_i32 = arith.constant 255 : i32
    %34 = tpu.dynamic_rotate %10 by %c255_i32 dim 1 : vector<16x256xf32>, i32 -> vector<16x256xf32>
    %c5 = arith.constant 5 : index
    %c0_21 = arith.constant 0 : index
    %c0_22 = arith.constant 0 : index
    %35 = vector.load %arg4[%c5, %c0_21, %c0_22] : memref<9x16x256xf32, #tpu.memory_space<vmem>>, vector<1x16x256xf32>
    %36 = vector.shape_cast %35 : vector<1x16x256xf32> to vector<16x256xf32>
    %37 = arith.mulf %34, %36 : vector<16x256xf32>
    %38 = arith.addf %33, %37 : vector<16x256xf32>
    %c241_i32 = arith.constant 241 : i32
    %39 = tpu.dynamic_rotate %10 by %c241_i32 dim 1 : vector<16x256xf32>, i32 -> vector<16x256xf32>
    %c6 = arith.constant 6 : index
    %c0_23 = arith.constant 0 : index
    %c0_24 = arith.constant 0 : index
    %40 = vector.load %arg4[%c6, %c0_23, %c0_24] : memref<9x16x256xf32, #tpu.memory_space<vmem>>, vector<1x16x256xf32>
    %41 = vector.shape_cast %40 : vector<1x16x256xf32> to vector<16x256xf32>
    %42 = arith.mulf %39, %41 : vector<16x256xf32>
    %43 = arith.addf %38, %42 : vector<16x256xf32>
    %c240_i32 = arith.constant 240 : i32
    %44 = tpu.dynamic_rotate %10 by %c240_i32 dim 1 : vector<16x256xf32>, i32 -> vector<16x256xf32>
    %c7 = arith.constant 7 : index
    %c0_25 = arith.constant 0 : index
    %c0_26 = arith.constant 0 : index
    %45 = vector.load %arg4[%c7, %c0_25, %c0_26] : memref<9x16x256xf32, #tpu.memory_space<vmem>>, vector<1x16x256xf32>
    %46 = vector.shape_cast %45 : vector<1x16x256xf32> to vector<16x256xf32>
    %47 = arith.mulf %44, %46 : vector<16x256xf32>
    %48 = arith.addf %43, %47 : vector<16x256xf32>
    %c239_i32 = arith.constant 239 : i32
    %49 = tpu.dynamic_rotate %10 by %c239_i32 dim 1 : vector<16x256xf32>, i32 -> vector<16x256xf32>
    %c8 = arith.constant 8 : index
    %c0_27 = arith.constant 0 : index
    %c0_28 = arith.constant 0 : index
    %50 = vector.load %arg4[%c8, %c0_27, %c0_28] : memref<9x16x256xf32, #tpu.memory_space<vmem>>, vector<1x16x256xf32>
    %51 = vector.shape_cast %50 : vector<1x16x256xf32> to vector<16x256xf32>
    %52 = arith.mulf %49, %51 : vector<16x256xf32>
    %53 = arith.addf %48, %52 : vector<16x256xf32>
    %cst_29 = arith.constant dense<0.000000e+00> : vector<16x256xf32>
    %54 = tpu.matmul %1, %53, %cst_29 {dimension_numbers = #tpu.dot_dimension_numbers<[1], [0], [0], [1], [0, 0, 1, 1], [], []>} : vector<16x16xf32>, vector<16x256xf32>, vector<16x256xf32> -> vector<16x256xf32>
    %55 = vector.broadcast %3 : vector<16x1xf32> to vector<16x256xf32>
    %56 = arith.addf %54, %55 : vector<16x256xf32>
    %cst_30 = arith.constant 0.000000e+00 : f32
    %57 = vector.broadcast %cst_30 : f32 to vector<16x256xf32>
    %58 = arith.maximumf %56, %57 : vector<16x256xf32>
    %c0_31 = arith.constant 0 : index
    %c0_32 = arith.constant 0 : index
    %c0_33 = arith.constant 0 : index
    %59 = vector.load %arg1[%c0_31, %c0_32, %c0_33] : memref<1x32x256xf32, #tpu.memory_space<vmem>>, vector<1x16x256xf32>
    %60 = vector.shape_cast %59 : vector<1x16x256xf32> to vector<16x256xf32>
    %c0_34 = arith.constant 0 : index
    %c0_35 = arith.constant 0 : index
    %c0_36 = arith.constant 0 : index
    %61 = vector.load %arg5[%c0_34, %c0_35, %c0_36] : memref<1x16x512xf32, #tpu.memory_space<vmem>>, vector<1x16x256xf32>
    %62 = vector.shape_cast %61 : vector<1x16x256xf32> to vector<16x256xf32>
    %63 = vector.shape_cast %60 : vector<16x256xf32> to vector<1x16x256xf32>
    tpu.vector_store %arg5[%c0_34, %c0_35, %c0_36], %63 {strides = array<i32>} : memref<1x16x512xf32, #tpu.memory_space<vmem>>, vector<1x16x256xf32>,
    %c0_37 = arith.constant 0 : index
    %c0_38 = arith.constant 0 : index
    %c256 = arith.constant 256 : index
    %64 = vector.load %arg5[%c0_37, %c0_38, %c256] : memref<1x16x512xf32, #tpu.memory_space<vmem>>, vector<1x16x256xf32>
    %65 = vector.shape_cast %64 : vector<1x16x256xf32> to vector<16x256xf32>
    %66 = vector.shape_cast %58 : vector<16x256xf32> to vector<1x16x256xf32>
    tpu.vector_store %arg5[%c0_37, %c0_38, %c256], %66 {strides = array<i32>} : memref<1x16x512xf32, #tpu.memory_space<vmem>>, vector<1x16x256xf32>,
    return
  }
  func.func @transform_0(%arg0: i32) -> (i32, i32, i32) {
    %c0_i32 = arith.constant 0 : i32
    %c0_i32_0 = arith.constant 0 : i32
    %c0_i32_1 = arith.constant 0 : i32
    return %arg0, %c0_i32, %c0_i32_0 : i32, i32, i32
  }
  func.func @transform_1(%arg0: i32) -> (i32, i32) {
    %c0_i32 = arith.constant 0 : i32
    %c0_i32_0 = arith.constant 0 : i32
    %c0_i32_1 = arith.constant 0 : i32
    return %c0_i32, %c0_i32_0 : i32, i32
  }
  func.func @transform_2(%arg0: i32) -> (i32, i32) {
    %c0_i32 = arith.constant 0 : i32
    %c0_i32_0 = arith.constant 0 : i32
    %c0_i32_1 = arith.constant 0 : i32
    return %c0_i32, %c0_i32_0 : i32, i32
  }
  func.func @transform_3(%arg0: i32) -> (i32, i32, i32) {
    %c0_i32 = arith.constant 0 : i32
    %c0_i32_0 = arith.constant 0 : i32
    %c0_i32_1 = arith.constant 0 : i32
    %c0_i32_2 = arith.constant 0 : i32
    return %c0_i32, %c0_i32_0, %c0_i32_1 : i32, i32, i32
  }
  func.func @transform_4(%arg0: i32) -> (i32, i32, i32) {
    %c0_i32 = arith.constant 0 : i32
    %c0_i32_0 = arith.constant 0 : i32
    %c0_i32_1 = arith.constant 0 : i32
    return %arg0, %c0_i32, %c0_i32_0 : i32, i32, i32
  }
}

</mosaic_0001>

<bundles_post_ra>
// kernel: inverted_residual_forward.1
= control target key start
LH: loop header
LB: loop body
LE: loop exit
PB: predicated region body
PF: predicated region fallthrough
CT: control target
= control target key end

     0   :  { %s802_s15 = smov 0   ;;  %s1135_s0 = inlined_call_operand.vmem [shape: f32[2,32,256], index: 0, kind: input, shape index: {}]   ;;  %s1136_s1 = inlined_call_operand.vmem [shape: f32[32,16], index: 1, kind: input, shape index: {}]   ;;  %s1137_s2 = inlined_call_operand.vmem [shape: f32[32,1], index: 2, kind: input, shape index: {}]   ;;  %s1138_s3 = inlined_call_operand.vmem [shape: f32[9,16,256], index: 3, kind: input, shape index: {}]   ;;  %s1139_s4 = inlined_call_operand.vmem [shape: f32[2,16,512], index: 4, kind: output, shape index: {}]  }
   0x1 LB: > { %s690_s16 = sadd.s32 4294967295, %s765_s15   ;;  %p694_p0 = scmp.ge.s32.totalorder %s765_s15, 1  ;;  %s765_s15 = sphi %s802_s15, %s14_s15  }
   0x2   : > { %p162_p1 = scmp.lt.s32.totalorder %s765_s15, 3 }
   0x4   : > { %p163_p2 = pnand %p694_p0, %p162_p1 }
   0x5   : > { %p188_p3 = scmp.lt.s32.totalorder (!%p163_p2), %s690_s16, 1  ;;  %s769_s6 = smov (!%p163_p2), 17  }
   0x6   : > { %166 = sbr.rel (%p163_p2) target bundleno = 609 (0x261), region = 36  ;;  %s770_s7 = smov (!%p163_p2), 16  }
   0x7   : > { %s771_s8 = smov (!%p163_p2), 15   ;;  %s772_s9 = smov (!%p163_p2), 1  }
   0x8   : > { %s773_s10 = smov (!%p163_p2), 127   ;;  %s774_s11 = smov (!%p163_p2), 113  }
   0x9   : > { %s775_s12 = smov (!%p163_p2), 112   ;;  %s776_s13 = smov (!%p163_p2), 111  }
   0xb   : > { %v767_v0 = vmov 0.0   ;;  %v768_v1 = vmov 0   ;;  %v203_v2 = vld [vmem:[%s1137_s2 + $0x8] sm:$0xff]  ;;  %s1141_s16 = smov (!%p188_p3, %s690_s16), 1  ;;  %v202_v3 = vld [vmem:[%s1137_s2] sm:$0xff]  ;;  %vm220_vm0 = vcmask 130048   ;;  %v325_v44 = vlaneseq }
   0xc   : > { %291 = vmatprep.mubr.f32.mxu0 %v767_v0  ;;  %757 = vset.pattern.permute.xlu0 %v768_v1  ;;  %s737_s21 = sshll.u32 %s1141_s16, 6  ;;  %v198_v12 = vld [vmem:[%s1136_s1] sm:$0xff]  ;;  %v199_v13 = vld [vmem:[%s1136_s1 + $0x8] sm:$0xff]  ;;  %v204_v28 = vld [vmem:[%s1137_s2 + $0x10] sm:$0xff] }
   0xd   : > { %217 = vperm.xlu0 %757, %v203_v2   ;;  %606 = vmatprep.mubr.f32.mxu1 %v767_v0  ;;  %s192_s24 = scalar_lea.vmem %s1135_s0, %s737_s21  ;;  %s824_s27 = scalar_lea.vmem %s1139_s4, %s737_s21  ;;  %v205_v29 = vld [vmem:[%s1137_s2 + $0x18] sm:$0xff]  ;;  %v905_v47 = vand.u32 127, %v325_v44  ;;  %v332_v51 = vld [vmem:[%s1138_s3] sm:$0xff]  ;;  %v333_v52 = vld [vmem:[%s1138_s3 + $0x8] sm:$0xff] }
   0xe   : > { %758 = vset.pattern.permute.xlu1 %v768_v1  ;;  %v209_v4 = vld [vmem:[%s192_s24 + $0x38] sm:$0xff]  ;;  %v623_v5 = vld [vmem:[%s192_s24] sm:$0xff]  ;;  %v624_v6 = vld [vmem:[%s192_s24 + $0x8] sm:$0xff] }
   0xf   : > { %255 = vmatprep.subr.mxu0 %v209_v4  ;;  %v625_v7 = vld [vmem:[%s192_s24 + $0x10] sm:$0xff]  ;;  %v626_v8 = vld [vmem:[%s192_s24 + $0x18] sm:$0xff]  ;;  %627 = vst [vmem:[%s824_s27] sm:$0xff] %v623_v5  ;;  %628 = vst [vmem:[%s824_s27 + $0x8] sm:$0xff] %v624_v6  ;;  %vm327_vm1 = vcmp.lt.s32.totalorder %v905_v47, 17  ;;  %vm352_vm2 = vcmp.lt.s32.totalorder %v905_v47, 16  ;;  %vm378_vm3 = vcmp.lt.s32.totalorder %v905_v47, 15 }
  0x10   : > { %v208_v9 = vld [vmem:[%s192_s24 + $0x30] sm:$0xff]  ;;  %629 = vst [vmem:[%s824_s27 + $0x20] sm:$0xff] %v625_v7  ;;  %630 = vst [vmem:[%s824_s27 + $0x28] sm:$0xff] %v626_v8  ;;  %v207_v10 = vld [vmem:[%s192_s24 + $0x28] sm:$0xff]  ;;  %vm404_vm4 = vcmp.lt.s32.totalorder %v905_v47, 1  ;;  %vm430_vm5 = vcmp.lt.s32.totalorder %v905_v47, 127 }
  0x11   : > { %212 = vperm.xlu0 %757, %v202_v3   ;;  %256 = vmatpush1.msra.mxu0 %v208_v9  ;;  %v206_v11 = vld [vmem:[%s192_s24 + $0x20] sm:$0xff]  ;;  %v702_v57 = vld [vmem:[%s1138_s3 + $0x88] sm:$0xff]  ;;  %v703_v3 = vld [vmem:[%s1138_s3 + $0x90] sm:$0xff]  ;;  %vm456_vm6 = vcmp.lt.s32.totalorder %v905_v47, 113  ;;  %vm482_vm7 = vcmp.lt.s32.totalorder %v905_v47, 112  ;;  %vm508_vm8 = vcmp.lt.s32.totalorder %v905_v47, 111 }
  0x12   : > { %257 = vmatprep.subr.mxu0 %v207_v10  ;;  %v701_v56 = vld [vmem:[%s1138_s3 + $0x80] sm:$0xff]  ;;  %v706_v59 = vld [vmem:[%s1138_s3 + $0x28] sm:$0xff]  ;;  %v201_v47 = vld [vmem:[%s1136_s1 + $0x18] sm:$0xff] }
  0x13   : > { %258 = vmatpush1.msra.mxu0 %v206_v11  ;;  %v705_v58 = vld [vmem:[%s1138_s3 + $0x20] sm:$0xff]  ;;  %v710_v9 = vld [vmem:[%s1138_s3 + $0x48] sm:$0xff] }
  0x14   : > { %699 = vmatmul.mubr.msk.f32.vlgmr.msra.gmra.mxu0 %vm220_vm0, %v198_v12  ;;  %v709_v8 = vld [vmem:[%s1138_s3 + $0x40] sm:$0xff]  ;;  %v704_v12 = vld [vmem:[%s1138_s3 + $0x98] sm:$0xff] }
  0x15   : > { %297 = vmatprep.mubr.f32.mxu0 %v767_v0 }
  0x18   : > { %700 = vmatmul.mubr.msk.f32.gmra.mxu0 %vm220_vm0, %v199_v13 }
  0x88   : > { %v218_v14 = vpop.permute.xlu0 %217 }
  0x8c   : > { %v213_v15 = vpop.permute.xlu0 %212 }
  0xd4   : > { %v293_v16 = vpop.f32.mrf.mxu0 }
  0xd5   : > { %v294_v17 = vadd.f32 %v293_v16, %v213_v15  ;;  %v335_v16 = vld [vmem:[%s1138_s3 + $0x18] sm:$0xff] }
  0xd6   : > { %v295_v18 = vpop.f32.mrf.mxu0 }
  0xd7   : > { %v839_v19 = vmax.f32 %v294_v17, 0.0  ;;  %v296_v20 = vadd.f32 %v295_v18, %v213_v15  ;;  %v334_v15 = vld [vmem:[%s1138_s3 + $0x10] sm:$0xff] }
  0xd8   : > { %v299_v22 = vpop.f32.mrf.mxu0 }
  0xd9   : > { %v841_v21 = vmax.f32 %v296_v20, 0.0  ;;  %317 = vrot.lane.b32.xlu0 %v839_v19, %s769_s6  ;;  %v300_v23 = vadd.f32 %v299_v22, %v218_v14  ;;  %v313_v1 = vmul.f32 %v701_v56, %v839_v19 }
  0xda   : > { %v301_v24 = vpop.f32.mrf.mxu0 }
  0xdb   : > { %321 = vrot.lane.b32.xlu1 %v841_v21, %s769_s6  ;;  %v858_v25 = vmax.f32 %v300_v23, 0.0  ;;  %v302_v26 = vadd.f32 %v301_v24, %v218_v14  ;;  %v314_v2 = vmul.f32 %v702_v57, %v841_v21  ;;  %v715_v57 = vld [vmem:[%s1138_s3 + $0x70] sm:$0xff] }
  0xdd   : > { %344 = vrot.lane.b32.xlu0 %v839_v19, %s770_s7  ;;  %v864_v27 = vmax.f32 %v302_v26, 0.0 }
  0xdf   : > { %348 = vrot.lane.b32.xlu1 %v841_v21, %s770_s7  ;;  %v316_v22 = vmul.f32 %v704_v12, %v864_v27 }
  0xe1   : > { %370 = vrot.lane.b32.xlu0 %v839_v19, %s771_s8 }
  0xe3   : > { %374 = vrot.lane.b32.xlu1 %v841_v21, %s771_s8 }
  0xe5   : > { %396 = vrot.lane.b32.xlu0 %v839_v19, %s772_s9 }
  0xe7   : > { %400 = vrot.lane.b32.xlu1 %v841_v21, %s772_s9 }
  0xe9   : > { %422 = vrot.lane.b32.xlu0 %v839_v19, %s773_s10 }
  0xeb   : > { %426 = vrot.lane.b32.xlu1 %v841_v21, %s773_s10 }
  0xed   : > { %448 = vrot.lane.b32.xlu0 %v839_v19, %s774_s11 }
  0xef   : > { %452 = vrot.lane.b32.xlu1 %v841_v21, %s774_s11 }
  0xf1   : > { %474 = vrot.lane.b32.xlu0 %v839_v19, %s775_s12 }
  0xf3   : > { %478 = vrot.lane.b32.xlu1 %v841_v21, %s775_s12 }
  0xf5   : > { %346 = vrot.lane.b32.xlu0 %v858_v25, %s770_s7 }
  0xf7   : > { %319 = vrot.lane.b32.xlu1 %v858_v25, %s769_s6 }
  0xf9   : > { %372 = vrot.lane.b32.xlu0 %v858_v25, %s771_s8 }
  0xfb   : > { %323 = vrot.lane.b32.xlu1 %v864_v27, %s769_s6 }
  0xfd   : > { %398 = vrot.lane.b32.xlu0 %v858_v25, %s772_s9 }
  0xff   : > { %350 = vrot.lane.b32.xlu1 %v864_v27, %s770_s7 }
 0x101   : > { %424 = vrot.lane.b32.xlu0 %v858_v25, %s773_s10 }
 0x103   : > { %376 = vrot.lane.b32.xlu1 %v864_v27, %s771_s8 }
 0x105   : > { %450 = vrot.lane.b32.xlu0 %v858_v25, %s774_s11 }
 0x107   : > { %402 = vrot.lane.b32.xlu1 %v864_v27, %s772_s9 }
 0x109   : > { %476 = vrot.lane.b32.xlu0 %v858_v25, %s775_s12 }
 0x10b   : > { %428 = vrot.lane.b32.xlu1 %v864_v27, %s773_s10 }
 0x10d   : > { %502 = vrot.lane.b32.xlu0 %v858_v25, %s776_s13 }
 0x10f   : > { %454 = vrot.lane.b32.xlu1 %v864_v27, %s774_s11 }
 0x111   : > { %500 = vrot.lane.b32.xlu0 %v839_v19, %s776_s13 }
 0x113   : > { %480 = vrot.lane.b32.xlu1 %v864_v27, %s775_s12 }
 0x115   : > { %528 = vperm.xlu0 %757, %v204_v28   ;;  %v707_v28 = vld [vmem:[%s1138_s3 + $0x30] sm:$0xff] }
 0x117   : > { %506 = vrot.lane.b32.xlu1 %v864_v27, %s776_s13  ;;  %v714_v27 = vld [vmem:[%s1138_s3 + $0x68] sm:$0xff] }
 0x11b   : > { %504 = vrot.lane.b32.xlu1 %v841_v21, %s776_s13  ;;  %v315_v21 = vmul.f32 %v703_v3, %v858_v25  ;;  %v713_v25 = vld [vmem:[%s1138_s3 + $0x60] sm:$0xff]  ;;  %v720_v3 = vld [vmem:[%s1138_s3 + $0xb8] sm:$0xff] }
 0x11f   : > { %533 = vperm.xlu1 %758, %v205_v29   ;;  %v708_v29 = vld [vmem:[%s1138_s3 + $0x38] sm:$0xff] }
 0x14b   : > { %v318_v30 = vpop.permute.xlu0 %317 }
 0x14d   : > { %v322_v31 = vpop.permute.xlu1 %321 }
 0x14e   : > { %v328_v53 = vsel %vm327_vm1, %v318_v30, %v322_v31  ;;  %v330_v54 = vsel %vm327_vm1, %v322_v31, %v318_v30 }
 0x14f   : > { %v345_v32 = vpop.permute.xlu0 %344  ;;  %v336_v62 = vmul.f32 %v332_v51, %v330_v54  ;;  %v337_v63 = vmul.f32 %v333_v52, %v328_v53 }
 0x151   : > { %v349_v33 = vpop.permute.xlu1 %348  ;;  %v340_v13 = vadd.f32 %v336_v62, %v313_v1  ;;  %v341_v14 = vadd.f32 %v337_v63, %v314_v2 }
 0x152   : > { %v353_v60 = vsel %vm352_vm2, %v345_v32, %v349_v33  ;;  %v355_v61 = vsel %vm352_vm2, %v349_v33, %v345_v32 }
 0x153   : > { %v371_v34 = vpop.permute.xlu0 %370  ;;  %v362_v6 = vmul.f32 %v705_v58, %v355_v61  ;;  %v363_v7 = vmul.f32 %v706_v59, %v353_v60  ;;  %v716_v58 = vld [vmem:[%s1138_s3 + $0x78] sm:$0xff] }
 0x155   : > { %v375_v35 = vpop.permute.xlu1 %374  ;;  %v366_v24 = vadd.f32 %v362_v6, %v340_v13  ;;  %v367_v26 = vadd.f32 %v363_v7, %v341_v14 }
 0x156   : > { %v379_v10 = vsel %vm378_vm3, %v371_v34, %v375_v35  ;;  %v381_v11 = vsel %vm378_vm3, %v375_v35, %v371_v34 }
 0x157   : > { %v889_v36 = vpop.permute.xlu0 %396  ;;  %v388_v19 = vmul.f32 %v709_v8, %v381_v11  ;;  %v389_v20 = vmul.f32 %v710_v9, %v379_v10 }
 0x159   : > { %v891_v37 = vpop.permute.xlu1 %400  ;;  %v393_v51 = vadd.f32 %v389_v20, %v367_v26 }
 0x15a   : > { %v405_v32 = vsel %vm404_vm4, %v889_v36, %v891_v37  ;;  %v407_v33 = vsel %vm404_vm4, %v891_v37, %v889_v36  ;;  %v392_v37 = vadd.f32 %v388_v19, %v366_v24 }
 0x15b   : > { %v893_v38 = vpop.permute.xlu0 %422  ;;  %v415_v56 = vmul.f32 %v714_v27, %v405_v32 }
 0x15d   : > { %v895_v39 = vpop.permute.xlu1 %426  ;;  %v419_v14 = vadd.f32 %v415_v56, %v393_v51 }
 0x15e   : > { %v431_v1 = vsel %vm430_vm5, %v893_v38, %v895_v39  ;;  %v433_v2 = vsel %vm430_vm5, %v895_v39, %v893_v38  ;;  %v717_v38 = vld [vmem:[%s1138_s3 + $0xa0] sm:$0xff]  ;;  %v718_v39 = vld [vmem:[%s1138_s3 + $0xa8] sm:$0xff] }
 0x15f   : > { %v897_v40 = vpop.permute.xlu0 %448 }
 0x161   : > { %v899_v41 = vpop.permute.xlu1 %452 }
 0x162   : > { %v457_v24 = vsel %vm456_vm6, %v897_v40, %v899_v41  ;;  %v459_v26 = vsel %vm456_vm6, %v899_v41, %v897_v40  ;;  %v722_v40 = vld [vmem:[%s1138_s3 + $0xc8] sm:$0xff] }
 0x163   : > { %v901_v42 = vpop.permute.xlu0 %474  ;;  %v467_v56 = vmul.f32 %v722_v40, %v459_v26 }
 0x165   : > { %v903_v43 = vpop.permute.xlu1 %478 }
 0x166   : > { %v483_v41 = vsel %vm482_vm7, %v901_v42, %v903_v43 }
 0x167   : > { %v347_v45 = vpop.permute.xlu0 %346 }
 0x169   : > { %v320_v46 = vpop.permute.xlu1 %319 }
 0x16b   : > { %v907_v48 = vpop.permute.xlu0 %372 }
 0x16d   : > { %v324_v49 = vpop.permute.xlu1 %323 }
 0x16e   : > { %v329_v17 = vsel %vm327_vm1, %v320_v46, %v324_v49  ;;  %v331_v18 = vsel %vm327_vm1, %v324_v49, %v320_v46  ;;  %v712_v46 = vld [vmem:[%s1138_s3 + $0x58] sm:$0xff] }
 0x16f   : > { %v910_v50 = vpop.permute.xlu0 %398  ;;  %v338_v34 = vmul.f32 %v334_v15, %v331_v18  ;;  %v339_v35 = vmul.f32 %v335_v16, %v329_v17  ;;  %v724_v15 = vld [vmem:[%s1138_s3 + $0xd8] sm:$0xff] }
 0x171   : > { %v351_v55 = vpop.permute.xlu1 %350  ;;  %v342_v60 = vadd.f32 %v338_v34, %v315_v21  ;;  %v343_v61 = vadd.f32 %v339_v35, %v316_v22  ;;  %v440_v22 = vmul.f32 %v717_v38, %v431_v1  ;;  %v485_v34 = vsel %vm482_vm7, %v903_v43, %v901_v42 }
 0x172   : > { %v354_v30 = vsel %vm352_vm2, %v347_v45, %v351_v55  ;;  %v356_v31 = vsel %vm352_vm2, %v351_v55, %v347_v45  ;;  %v711_v45 = vld [vmem:[%s1138_s3 + $0x50] sm:$0xff]  ;;  %v414_v55 = vmul.f32 %v713_v25, %v407_v33  ;;  %v721_v33 = vld [vmem:[%s1138_s3 + $0xc0] sm:$0xff] }
 0x173   : > { %v945_v4 = vpop.permute.xlu0 %424  ;;  %v364_v52 = vmul.f32 %v707_v28, %v356_v31  ;;  %v365_v53 = vmul.f32 %v708_v29, %v354_v30  ;;  %v727_v28 = vld [vmem:[%s1138_s3 + $0xf0] sm:$0xff]  ;;  %v728_v29 = vld [vmem:[%s1138_s3 + $0xf8] sm:$0xff] }
 0x174   : > { %v418_v13 = vadd.f32 %v414_v55, %v392_v37  ;;  %v466_v55 = vmul.f32 %v721_v33, %v457_v24 }
 0x175   : > { %v377_v5 = vpop.permute.xlu1 %376  ;;  %v368_v7 = vadd.f32 %v364_v52, %v342_v60  ;;  %v369_v8 = vadd.f32 %v365_v53, %v343_v61  ;;  %v731_v53 = vld [vmem:[%s1138_s3 + $0x110] sm:$0xff] }
 0x176   : > { %v380_v49 = vsel %vm378_vm3, %v907_v48, %v377_v5  ;;  %v382_v36 = vsel %vm378_vm3, %v377_v5, %v907_v48  ;;  %v444_v42 = vadd.f32 %v440_v22, %v418_v13 }
 0x177   : > { %v451_v44 = vpop.permute.xlu0 %450  ;;  %v390_v62 = vmul.f32 %v711_v45, %v382_v36  ;;  %v391_v63 = vmul.f32 %v712_v46, %v380_v49  ;;  %v725_v45 = vld [vmem:[%s1138_s3 + $0xe0] sm:$0xff]  ;;  %v726_v46 = vld [vmem:[%s1138_s3 + $0xe8] sm:$0xff] }
 0x178   : > { %v493_v60 = vmul.f32 %v726_v46, %v485_v34 }
 0x179   : > { %v403_v23 = vpop.permute.xlu1 %402  ;;  %v394_v18 = vadd.f32 %v390_v62, %v368_v7  ;;  %v395_v19 = vadd.f32 %v391_v63, %v369_v8 }
 0x17a   : > { %v406_v59 = vsel %vm404_vm4, %v910_v50, %v403_v23  ;;  %v408_v48 = vsel %vm404_vm4, %v403_v23, %v910_v50  ;;  %v719_v50 = vld [vmem:[%s1138_s3 + $0xb0] sm:$0xff]  ;;  %v441_v23 = vmul.f32 %v718_v39, %v433_v2 }
 0x17b   : > { %v416_v9 = vmul.f32 %v715_v57, %v408_v48  ;;  %v417_v10 = vmul.f32 %v716_v58, %v406_v59  ;;  %v477_v11 = vpop.permute.xlu0 %476  ;;  %v492_v48 = vmul.f32 %v725_v45, %v483_v41 }
 0x17c   : > { %v445_v43 = vadd.f32 %v441_v23, %v419_v14 }
 0x17d   : > { %v429_v54 = vpop.permute.xlu1 %428  ;;  %v420_v30 = vadd.f32 %v416_v9, %v394_v18  ;;  %v421_v31 = vadd.f32 %v417_v10, %v395_v19 }
 0x17e   : > { %v432_v5 = vsel %vm430_vm5, %v945_v4, %v429_v54  ;;  %v434_v6 = vsel %vm430_vm5, %v429_v54, %v945_v4  ;;  %v723_v4 = vld [vmem:[%s1138_s3 + $0xd0] sm:$0xff]  ;;  %v732_v54 = vld [vmem:[%s1138_s3 + $0x118] sm:$0xff]  ;;  %v471_v38 = vadd.f32 %v467_v56, %v445_v43 }
 0x17f   : > { %v442_v20 = vmul.f32 %v719_v50, %v432_v5  ;;  %v443_v21 = vmul.f32 %v720_v3, %v434_v6  ;;  %v503_v37 = vpop.permute.xlu0 %502  ;;  %v729_v3 = vld [vmem:[%s1138_s3 + $0x100] sm:$0xff]  ;;  %v730_v5 = vld [vmem:[%s1138_s3 + $0x108] sm:$0xff]  ;;  %v470_v6 = vadd.f32 %v466_v55, %v444_v42 }
 0x180   : > { %v497_v13 = vadd.f32 %v493_v60, %v471_v38 }
 0x181   : > { %v455_v12 = vpop.permute.xlu1 %454  ;;  %v446_v49 = vadd.f32 %v442_v20, %v420_v30  ;;  %v447_v36 = vadd.f32 %v443_v21, %v421_v31 }
 0x182   : > { %v458_v16 = vsel %vm456_vm6, %v451_v44, %v455_v12  ;;  %v460_v17 = vsel %vm456_vm6, %v455_v12, %v451_v44  ;;  %v496_v12 = vadd.f32 %v492_v48, %v470_v6 }
 0x183   : > { %v468_v25 = vmul.f32 %v723_v4, %v458_v16  ;;  %v469_v27 = vmul.f32 %v724_v15, %v460_v17  ;;  %v501_v39 = vpop.permute.xlu0 %500  ;;  %v200_v17 = vld [vmem:[%s1136_s1 + $0x10] sm:$0xff] }
 0x185   : > { %v481_v32 = vpop.permute.xlu1 %480  ;;  %v472_v57 = vadd.f32 %v468_v25, %v446_v49  ;;  %v473_v59 = vadd.f32 %v469_v27, %v447_v36 }
 0x186   : > { %v484_v35 = vsel %vm482_vm7, %v477_v11, %v481_v32  ;;  %v486_v44 = vsel %vm482_vm7, %v481_v32, %v477_v11 }
 0x187   : > { %v494_v51 = vmul.f32 %v727_v28, %v484_v35  ;;  %v495_v52 = vmul.f32 %v728_v29, %v486_v44 }
 0x189   : > { %v507_v58 = vpop.permute.xlu1 %506  ;;  %v499_v1 = vadd.f32 %v495_v52, %v473_v59  ;;  %v498_v50 = vadd.f32 %v494_v51, %v472_v57 }
 0x18a   : > { %v510_v61 = vsel %vm508_vm8, %v503_v37, %v507_v58  ;;  %v512_v62 = vsel %vm508_vm8, %v507_v58, %v503_v37 }
 0x18b   : > { %v520_v63 = vmul.f32 %v731_v53, %v510_v61  ;;  %v521_v2 = vmul.f32 %v732_v54, %v512_v62 }
 0x18d   : > { %v505_v7 = vpop.permute.xlu1 %504  ;;  %v525_v8 = vadd.f32 %v521_v2, %v499_v1  ;;  %v524_v9 = vadd.f32 %v520_v63, %v498_v50 }
 0x18e   : > { %v509_v10 = vsel %vm508_vm8, %v501_v39, %v505_v7  ;;  %v511_v11 = vsel %vm508_vm8, %v505_v7, %v501_v39 }
 0x18f   : > { %v518_v14 = vmul.f32 %v729_v3, %v509_v10  ;;  %v519_v4 = vmul.f32 %v730_v5, %v511_v11  ;;  %570 = vmatprep.subr.mxu1 %v525_v8 }
 0x190   : > { %571 = vmatpush1.msra.mxu1 %v524_v9  ;;  %v529_v18 = vpop.permute.xlu0 %528 }
 0x191   : > { %v523_v15 = vadd.f32 %v519_v4, %v497_v13  ;;  %v522_v16 = vadd.f32 %v518_v14, %v496_v12 }
 0x193   : > { %572 = vmatprep.subr.mxu1 %v523_v15 }
 0x194   : > { %573 = vmatpush1.msra.mxu1 %v522_v16 }
 0x195   : > { %733 = vmatmul.mubr.msk.f32.vlgmr.msra.gmra.mxu1 %vm220_vm0, %v200_v17 }
 0x196   : > { %612 = vmatprep.mubr.f32.mxu1 %v767_v0 }
 0x199   : > { %734 = vmatmul.mubr.msk.f32.gmra.mxu1 %vm220_vm0, %v201_v47 }
 0x19a   : > { %v534_v22 = vpop.permute.xlu1 %533 }
 0x255   : > { %v608_v19 = vpop.f32.mrf.mxu1 }
 0x256   : > { %v609_v20 = vadd.f32 %v608_v19, %v529_v18 }
 0x257   : > { %v610_v21 = vpop.f32.mrf.mxu1 }
 0x258   : > { %v619_v23 = vmax.f32 %v609_v20, 0.0  ;;  %v611_v24 = vadd.f32 %v610_v21, %v529_v18 }
 0x259   : > { %v614_v26 = vpop.f32.mrf.mxu1 }
 0x25a   : > { %631 = vst [vmem:[%s824_s27 + $0x10] sm:$0xff] %v619_v23  ;;  %v620_v28 = vmax.f32 %v611_v24, 0.0  ;;  %v615_v29 = vadd.f32 %v614_v26, %v534_v22 }
 0x25b   : > { %v616_v0 = vpop.f32.mrf.mxu1 }
 0x25c   : > { %632 = vst [vmem:[%s824_s27 + $0x18] sm:$0xff] %v620_v28  ;;  %v621_v30 = vmax.f32 %v615_v29, 0.0  ;;  %v617_v31 = vadd.f32 %v616_v0, %v534_v22 }
 0x25e   : > { %633 = vst [vmem:[%s824_s27 + $0x30] sm:$0xff] %v621_v30  ;;  %v622_v25 = vmax.f32 %v617_v31, 0.0 }
 0x260   : > { %634 = vst [vmem:[%s824_s27 + $0x38] sm:$0xff] %v622_v25 }
 0x261 PF: > { %s14_s15 = sadd.s32 1, %s765_s15  }
 0x262   : > { %p11_p4 = scmp.ge.s32.totalorder %s14_s15, 4  }
 0x264   :  { %13 = sbr.rel (!%p11_p4) target bundleno = 1 (0x1), region = 74 }

</bundles_post_ra>
